<compile_context>
chip_gen: v7x
topology: tpu7x:2x2x1
jax: 0.10.0
libtpu: 0.0.40
codegen_flags: <defaults>
</compile_context>

<pallas_src>
import jax
import jax.numpy as jnp
from jax import lax
from jax.experimental import pallas as pl
from jax.experimental.pallas import tpu as pltpu


def _round_up(x, m):
    return (x + m - 1) // m * m


# --------------------------------------------------------------------------
# Kernel 1: conv as one im2col matmul, bn0 pre-folded, bn1 + relu fused.
#   patches_ref: (tm, K2) f32   convw_ref: (K2, C) f32   bn1_ref: (2, C) f32
#   out_ref    : (tm, C)  f32
# --------------------------------------------------------------------------
def _conv_kernel(patches_ref, convw_ref, bn1_ref, out_ref):
    z = jnp.dot(patches_ref[...], convw_ref[...],
                preferred_element_type=jnp.float32)
    out_ref[...] = jnp.maximum(z * bn1_ref[0:1, :] + bn1_ref[1:2, :], 0.0)


# --------------------------------------------------------------------------
# Kernel 2: fc as one large matmul tiled over the contraction axis (grid axis k),
# f32 accumulator in VMEM scratch, bn2 + relu at the last step, bf16 hid out.
#   y_ref: (B, tk) f32   wr_ref: (tk, H) f32   bn2_ref: (2, H) f32
#   hid_ref: (B, H) bf16   acc_ref: (B, H) f32 scratch
# --------------------------------------------------------------------------
def _fc_kernel(y_ref, wr_ref, bn2_ref, hid_ref, acc_ref):
    k = pl.program_id(0)

    @pl.when(k == 0)
    def _():
        acc_ref[...] = jnp.zeros_like(acc_ref)

    acc_ref[...] += jnp.dot(y_ref[...], wr_ref[...],
                            preferred_element_type=jnp.float32)

    @pl.when(k == pl.num_programs(0) - 1)
    def _():
        hid = jnp.maximum(acc_ref[...] * bn2_ref[0:1, :] + bn2_ref[1:2, :], 0.0)
        hid_ref[...] = hid.astype(hid_ref.dtype)


# --------------------------------------------------------------------------
# Kernel 3 (hot path): score matmul + sigmoid over entity tiles.
#   hid_ref: (B, H) bf16 (grid-invariant)   ent_ref: (tile_n, H) bf16
#   out_ref: (B, tile_n) f32
# Entity table is streamed untransposed; contraction is on the shared H axis.
# --------------------------------------------------------------------------
def _score_kernel(hid_ref, ent_ref, out_ref):
    scores = lax.dot_general(
        hid_ref[...], ent_ref[...],
        dimension_numbers=(((1,), (1,)), ((), ())),   # (B,H) x (Tn,H) -> (B,Tn)
        preferred_element_type=jnp.float32)
    out_ref[...] = jax.nn.sigmoid(scores).astype(out_ref.dtype)


def conve_forward(head, rel, all_ent, params, *, k_h, k_w, ker_sz,
                  tile_n=512, tile_k_fc=512, tile_m_conv=256):
    B, D = head.shape
    assert D == k_h * k_w
    C = params["conv_w"].shape[0]
    K2 = ker_sz * ker_sz
    flat_h = 2 * k_h - ker_sz + 1
    flat_w = k_w - ker_sz + 1
    P = flat_h * flat_w
    H = D
    N = all_ent.shape[0]
    eps = 1e-5

    # ---- pad the query batch to >= 8 rows (full sublane, unmasked stores) ----
    b_pad = _round_up(max(B, 8), 8)
    head_p = jnp.pad(head.astype(jnp.float32), ((0, b_pad - B), (0, 0)))
    rel_p = jnp.pad(rel.astype(jnp.float32), ((0, b_pad - B), (0, 0)))

    # ---- glue: ConvE interleaved image + im2col patches (b_pad*P, K2) ----
    img = jnp.stack([head_p, rel_p], axis=-1).reshape(b_pad, 2 * k_h, k_w)
    patches = jnp.stack(
        [img[:, di:di + flat_h, dj:dj + flat_w]
         for di in range(ker_sz) for dj in range(ker_sz)], axis=-1)   # (b,fh,fw,K2)
    patches = patches.reshape(b_pad * P, K2).astype(jnp.float32)

    # ---- glue: fold BN running stats (eval mode) into scale/shift ----
    def bn_fold(g, b, m, v):
        s = g / jnp.sqrt(v + eps)
        return s, b - m * s

    s0, sh0 = bn_fold(*params["bn0"])          # shape (1,)
    s1, sh1 = bn_fold(*params["bn1"])          # (C,)
    s2, sh2 = bn_fold(*params["bn2"])          # (H,)
    s0 = s0.reshape(())
    sh0 = sh0.reshape(())

    convw = params["conv_w"].reshape(C, K2).T.astype(jnp.float32)     # (K2, C)
    # Fold bn0 into the conv: conv(x*s0 + sh0) = s0*conv(x) + sh0*sum_k w[k,c]
    convw_eff = convw * s0
    sumw = jnp.sum(convw, axis=0)                                     # (C,)
    bn1_p = jnp.stack([s1, sh1 + s1 * sh0 * sumw]).astype(jnp.float32)  # (2, C)
    bn2_p = jnp.stack([s2, sh2]).astype(jnp.float32)                    # (2, H)

    # ---- stage 1: conv (grid over row tiles of b_pad*P) ----
    BP = b_pad * P
    tm = min(tile_m_conv, _round_up(BP, 8))
    BP_pad = _round_up(BP, tm)
    patches = jnp.pad(patches, ((0, BP_pad - BP), (0, 0)))

    conv_out = pl.pallas_call(
        _conv_kernel,
        out_shape=jax.ShapeDtypeStruct((BP_pad, C), jnp.float32),
        grid=(BP_pad // tm,),
        in_specs=[
            pl.BlockSpec((tm, K2), lambda i: (i, 0)),
            pl.BlockSpec((K2, C), lambda i: (0, 0)),
            pl.BlockSpec((2, C), lambda i: (0, 0)),
        ],
        out_specs=pl.BlockSpec((tm, C), lambda i: (i, 0)),
        compiler_params=pltpu.CompilerParams(
            dimension_semantics=("parallel",)),
    )(patches, convw_eff, bn1_p)

    # Free relayout: row-major (b_pad*P, C) is bit-identical to (b_pad, P*C).
    y2 = conv_out[:BP].reshape(b_pad, P * C)

    # fc weight re-laid so column index is p*C + c  (matches y2's layout).
    wr = params["fc_w"].reshape(H, C, P).transpose(2, 1, 0).reshape(P * C, H)
    wr = wr.astype(jnp.float32)

    PC = P * C
    tk = min(tile_k_fc, _round_up(PC, 128))
    PC_pad = _round_up(PC, tk)
    y2 = jnp.pad(y2, ((0, 0), (0, PC_pad - PC)))
    wr = jnp.pad(wr, ((0, PC_pad - PC), (0, 0)))

    # ---- stage 2: fc + bn2 + relu -> hid (bf16) ----
    hid = pl.pallas_call(
        _fc_kernel,
        out_shape=jax.ShapeDtypeStruct((b_pad, H), jnp.bfloat16),
        grid=(PC_pad // tk,),
        in_specs=[
            pl.BlockSpec((b_pad, tk), lambda k: (0, k)),
            pl.BlockSpec((tk, H), lambda k: (k, 0)),
            pl.BlockSpec((2, H), lambda k: (0, 0)),
        ],
        out_specs=pl.BlockSpec((b_pad, H), lambda k: (0, 0)),
        scratch_shapes=[pltpu.VMEM((b_pad, H), jnp.float32)],
        compiler_params=pltpu.CompilerParams(
            dimension_semantics=("arbitrary",)),
    )(y2, wr, bn2_p)

    # ---- stage 3: score matmul + sigmoid over bf16 entity tiles ----
    # TODO(synk): cache this bf16 table across calls instead of casting per call.
    ent_bf16 = all_ent.astype(jnp.bfloat16)                           # (N, H)
    tile_n = min(tile_n, _round_up(N, 128))
    n_pad = _round_up(N, tile_n)
    if n_pad != N:
        ent_bf16 = jnp.pad(ent_bf16, ((0, n_pad - N), (0, 0)))

    score_vmem = (2 * tile_n * H * 2          # double-buffered ent tiles (bf16)
                  + 2 * b_pad * tile_n * 4    # double-buffered out tiles (f32)
                  + 2 * b_pad * H * 2         # resident hid (bf16)
                  + (8 << 20))                # headroom
    score_vmem = min(max(score_vmem, 16 << 20), 48 << 20)

    out = pl.pallas_call(
        _score_kernel,
        out_shape=jax.ShapeDtypeStruct((b_pad, n_pad), jnp.float32),
        grid=(n_pad // tile_n,),
        in_specs=[
            pl.BlockSpec((b_pad, H), lambda n: (0, 0)),       # hid (invariant)
            pl.BlockSpec((tile_n, H), lambda n: (n, 0)),      # entity tile
        ],
        out_specs=pl.BlockSpec((b_pad, tile_n), lambda n: (0, n)),
        compiler_params=pltpu.CompilerParams(
            dimension_semantics=("parallel",),                # v7x: shard over TCs
            vmem_limit_bytes=int(score_vmem)),
    )(hid, ent_bf16)

    return out[:B, :N]


def conve_reference(head, rel, all_ent, params, *, k_h, k_w, ker_sz):
    """Pure-JAX (f32) reference mirroring the PyTorch forward (eval mode)."""
    eps = 1e-5
    B, D = head.shape
    C = params["conv_w"].shape[0]
    flat_h = 2 * k_h - ker_sz + 1
    flat_w = k_w - ker_sz + 1
    img = jnp.stack([head, rel], axis=-1).reshape(B, 1, 2 * k_h, k_w)

    def bn(x, g, b, m, v, shape):
        s = g / jnp.sqrt(v + eps)
        return x * s.reshape(shape) + (b - m * s).reshape(shape)

    x = bn(img, *params["bn0"], (1, 1, 1, 1))
    x = jax.lax.conv_general_dilated(
        x, params["conv_w"], window_strides=(1, 1), padding="VALID",
        dimension_numbers=("NCHW", "OIHW", "NCHW"))
    x = bn(x, *params["bn1"], (1, C, 1, 1))
    x = jnp.maximum(x, 0.0)
    x = x.reshape(B, C * flat_h * flat_w)
    x = x @ params["fc_w"].T
    x = bn(x, *params["bn2"], (1, D))
    x = jnp.maximum(x, 0.0)
    return jax.nn.sigmoid(x @ all_ent.T)


if __name__ == "__main__":
    B, k_h, k_w, ker_sz, C, N = 2, 8, 4, 3, 4, 300
    D = k_h * k_w                      # h_dim = 32
    flat_h = 2 * k_h - ker_sz + 1
    flat_w = k_w - ker_sz + 1
    flat_sz = flat_h * flat_w * C

    key = jax.random.PRNGKey(0)
    ks = jax.random.split(key, 8)
    head = jax.random.normal(ks[0], (B, D), jnp.float32)
    rel = jax.random.normal(ks[1], (B, D), jnp.float32)
    all_ent = 0.1 * jax.random.normal(ks[2], (N, D), jnp.float32)

    def bn_params(k, n):
        k1, k2, k3, k4 = jax.random.split(k, 4)
        gamma = 1.0 + 0.1 * jax.random.normal(k1, (n,), jnp.float32)
        beta = 0.1 * jax.random.normal(k2, (n,), jnp.float32)
        mean = 0.1 * jax.random.normal(k3, (n,), jnp.float32)
        var = 1.0 + 0.1 * jax.random.uniform(k4, (n,), jnp.float32)
        return (gamma, beta, mean, var)

    params = {
        "conv_w": 0.2 * jax.random.normal(ks[3], (C, 1, ker_sz, ker_sz), jnp.float32),
        "fc_w": 0.1 * jax.random.normal(ks[4], (D, flat_sz), jnp.float32),
        "bn0": bn_params(ks[5], 1),
        "bn1": bn_params(ks[6], C),
        "bn2": bn_params(ks[7], D),
    }

    # tile_n=128 only so the SMALL demo exercises multiple entity tiles and the
    # ragged-N (300 -> 384) padding path; production sizes should keep the
    # default tile_n=512 (or larger).
    out = conve_forward(head, rel, all_ent, params,
                        k_h=k_h, k_w=k_w, ker_sz=ker_sz, tile_n=128)
    out = jax.block_until_ready(out)

    ref = conve_reference(head, rel, all_ent, params, k_h=k_h, k_w=k_w, ker_sz=ker_sz)
    assert out.shape == (B, N), out.shape
    err = float(jnp.max(jnp.abs(out - ref)))
    # bf16 entity/hid stream on the score path => relaxed tolerance vs f32 reference.
    assert err < 2e-2, err
    print("KERNEL_OK")
</pallas_src>

<mosaic_0001>
module attributes {stable_mosaic.version = 11 : i64} {
  func.func @_conv_kernel(%arg0: i32, %arg1: memref<224x9xf32, #tpu.memory_space<vmem>>, %arg2: memref<9x4xf32, #tpu.memory_space<vmem>>, %arg3: memref<2x4xf32, #tpu.memory_space<vmem>>, %arg4: memref<224x4xf32, #tpu.memory_space<vmem>>) attributes {dimension_semantics = [#tpu.dimension_semantics<parallel>], iteration_bounds = array<i64: 1>, scalar_prefetch = 0 : i64, scratch_operands = 0 : i64, tpu.core_type = #tpu.core_type<tc>, window_params = [{transform_indices = @transform_0, window_bounds = array<i64: 224, 9>}, {pipeline_mode = #tpu.pipeline_mode<synchronous>, transform_indices = @transform_1, window_bounds = array<i64: 9, 4>}, {pipeline_mode = #tpu.pipeline_mode<synchronous>, transform_indices = @transform_2, window_bounds = array<i64: 2, 4>}, {transform_indices = @transform_3, window_bounds = array<i64: 224, 4>}]} {
    %c0 = arith.constant 0 : index
    %c0_0 = arith.constant 0 : index
    %0 = vector.load %arg1[%c0, %c0_0] : memref<224x9xf32, #tpu.memory_space<vmem>>, vector<224x9xf32>
    %c0_1 = arith.constant 0 : index
    %c0_2 = arith.constant 0 : index
    %1 = vector.load %arg2[%c0_1, %c0_2] : memref<9x4xf32, #tpu.memory_space<vmem>>, vector<9x4xf32>
    %cst = arith.constant dense<0.000000e+00> : vector<224x4xf32>
    %2 = tpu.matmul %0, %1, %cst {dimension_numbers = #tpu.dot_dimension_numbers<[1], [0], [0], [1], [0, 0, 1, 1], [], []>} : vector<224x9xf32>, vector<9x4xf32>, vector<224x4xf32> -> vector<224x4xf32>
    %c0_3 = arith.constant 0 : index
    %c0_4 = arith.constant 0 : index
    %3 = vector.load %arg3[%c0_3, %c0_4] : memref<2x4xf32, #tpu.memory_space<vmem>>, vector<1x4xf32>
    %4 = vector.broadcast %3 : vector<1x4xf32> to vector<224x4xf32>
    %5 = arith.mulf %2, %4 : vector<224x4xf32>
    %c1 = arith.constant 1 : index
    %c0_5 = arith.constant 0 : index
    %6 = vector.load %arg3[%c1, %c0_5] : memref<2x4xf32, #tpu.memory_space<vmem>>, vector<1x4xf32>
    %7 = vector.broadcast %6 : vector<1x4xf32> to vector<224x4xf32>
    %8 = arith.addf %5, %7 : vector<224x4xf32>
    %cst_6 = arith.constant 0.000000e+00 : f32
    %9 = vector.broadcast %cst_6 : f32 to vector<224x4xf32>
    %10 = arith.maximumf %8, %9 : vector<224x4xf32>
    %c0_7 = arith.constant 0 : index
    %c0_8 = arith.constant 0 : index
    %11 = vector.load %arg4[%c0_7, %c0_8] : memref<224x4xf32, #tpu.memory_space<vmem>>, vector<224x4xf32>
    tpu.vector_store %arg4[%c0_7, %c0_8], %10 {strides = array<i32>} : memref<224x4xf32, #tpu.memory_space<vmem>>, vector<224x4xf32>,
    return
  }
  func.func @transform_0(%arg0: i32) -> (i32, i32) {
    %c0_i32 = arith.constant 0 : i32
    %c0_i32_0 = arith.constant 0 : i32
    return %arg0, %c0_i32 : i32, i32
  }
  func.func @transform_1(%arg0: i32) -> (i32, i32) {
    %c0_i32 = arith.constant 0 : i32
    %c0_i32_0 = arith.constant 0 : i32
    %c0_i32_1 = arith.constant 0 : i32
    return %c0_i32, %c0_i32_0 : i32, i32
  }
  func.func @transform_2(%arg0: i32) -> (i32, i32) {
    %c0_i32 = arith.constant 0 : i32
    %c0_i32_0 = arith.constant 0 : i32
    %c0_i32_1 = arith.constant 0 : i32
    return %c0_i32, %c0_i32_0 : i32, i32
  }
  func.func @transform_3(%arg0: i32) -> (i32, i32) {
    %c0_i32 = arith.constant 0 : i32
    %c0_i32_0 = arith.constant 0 : i32
    return %arg0, %c0_i32 : i32, i32
  }
}

</mosaic_0001>

<bundles_post_ra>
// kernel: tpu_custom_call.1
= control target key start
LH: loop header
LB: loop body
LE: loop exit
PB: predicated region body
PF: predicated region fallthrough
CT: control target
= control target key end

     0   :  { %vm129_vm0 = vcmask 1040384   ;;  %vm44_vm1 = vcmask 72704   ;;  %vm581_vm2 = vmmov 1   ;;  %vm432_vm4 = vcmask 31744   ;;  %s898_s1 = inlined_call_operand.vmem [shape: f32[9,4], index: 1, kind: input, shape index: {}]   ;;  %s899_s0 = inlined_call_operand.vmem [shape: f32[224,9], index: 0, kind: input, shape index: {}]   ;;  %s900_s2 = inlined_call_operand.vmem [shape: f32[2,4], index: 2, kind: input, shape index: {}]   ;;  %s901_s3 = inlined_call_operand.vmem [shape: f32[224,4], index: 3, kind: output, shape index: {}]  }
   0x1   :  { %v42_v0 = vld [vmem:[%s898_s1] sm:$0xff]  ;;  %v43_v1 = vld [vmem:[%s898_s1 + $0x8] sm:$0x1]  ;;  %vm573_vm3 = vmpackc.low %vm129_vm0, %vm581_vm2 }
   0x2   :  { %v572_v2 = vpack.c.bf16 %v43_v1, %v42_v0  ;;  %v14_v3 = vld [vmem:[%s899_s0] sm:$0xff]  ;;  %v28_v4 = vld [vmem:[%s899_s0 + $0x70] sm:$0xff]  ;;  %v15_v5 = vld [vmem:[%s899_s0 + $0x8] sm:$0xff] }
   0x3   :  { %530 = vmatprep.mubr.msk.f32.mxu0 %vm44_vm1, %v14_v3  ;;  %551 = vmatprep.mubr.msk.f32.mxu1 %vm44_vm1, %v28_v4  ;;  %v29_v6 = vld [vmem:[%s899_s0 + $0x78] sm:$0xff]  ;;  %v16_v7 = vld [vmem:[%s899_s0 + $0x10] sm:$0xff]  ;;  %v30_v8 = vld [vmem:[%s899_s0 + $0x80] sm:$0xff] }
   0x4   :  { %574 = vmatprep.subr.msk.bf16.mxu0 %vm573_vm3, %v572_v2  ;;  %578 = vmatprep.subr.msk.bf16.mxu1 %vm573_vm3, %v572_v2  ;;  %v17_v9 = vld [vmem:[%s899_s0 + $0x18] sm:$0xff]  ;;  %v31_v10 = vld [vmem:[%s899_s0 + $0x88] sm:$0xff]  ;;  %v18_v11 = vld [vmem:[%s899_s0 + $0x20] sm:$0xff] }
   0x5   :  { %577 = vmatpush3.bf16.msk.msra.mxu0 %vm573_vm3, %v572_v2  ;;  %579 = vmatpush3.bf16.msk.msra.mxu1 %vm573_vm3, %v572_v2  ;;  %v32_v12 = vld [vmem:[%s899_s0 + $0x90] sm:$0xff]  ;;  %v19_v13 = vld [vmem:[%s899_s0 + $0x28] sm:$0xff]  ;;  %v33_v14 = vld [vmem:[%s899_s0 + $0x98] sm:$0xff] }
   0x6   :  { %v20_v15 = vld [vmem:[%s899_s0 + $0x30] sm:$0xff]  ;;  %v34_v16 = vld [vmem:[%s899_s0 + $0xa0] sm:$0xff]  ;;  %v21_v17 = vld [vmem:[%s899_s0 + $0x38] sm:$0xff] }
   0x7   :  { %v35_v18 = vld [vmem:[%s899_s0 + $0xa8] sm:$0xff]  ;;  %v22_v19 = vld [vmem:[%s899_s0 + $0x40] sm:$0xff]  ;;  %v36_v20 = vld [vmem:[%s899_s0 + $0xb0] sm:$0xff] }
   0x8   :  { %531 = vmatmul.mubr.msk.f32.vlgmr.msra.gmra.mrb[0].mxu0 %vm44_vm1, %v15_v5  ;;  %552 = vmatmul.mubr.msk.f32.vlgmr.msra.gmra.mrb[0].mxu1 %vm44_vm1, %v29_v6  ;;  %v23_v21 = vld [vmem:[%s899_s0 + $0x48] sm:$0xff]  ;;  %v37_v22 = vld [vmem:[%s899_s0 + $0xb8] sm:$0xff]  ;;  %v24_v23 = vld [vmem:[%s899_s0 + $0x50] sm:$0xff] }
   0x9   :  { %533 = vmatprep.mubr.msk.f32.mxu0 %vm44_vm1, %v16_v7  ;;  %554 = vmatprep.mubr.msk.f32.mxu1 %vm44_vm1, %v30_v8  ;;  %v38_v24 = vld [vmem:[%s899_s0 + $0xc0] sm:$0xff]  ;;  %v25_v25 = vld [vmem:[%s899_s0 + $0x58] sm:$0xff]  ;;  %v39_v26 = vld [vmem:[%s899_s0 + $0xc8] sm:$0xff] }
   0xa   :  { %v26_v27 = vld [vmem:[%s899_s0 + $0x60] sm:$0xff]  ;;  %v40_v28 = vld [vmem:[%s899_s0 + $0xd0] sm:$0xff]  ;;  %v27_v29 = vld [vmem:[%s899_s0 + $0x68] sm:$0xff] }
   0xb   :  { %v41_v30 = vld [vmem:[%s899_s0 + $0xd8] sm:$0xff]  ;;  %v723_v31 = vld [vmem:[%s900_s2] ss:$0 sm:$0xff]  ;;  %v728_v33 = vld [vmem:[%s900_s2 + $0x1] ss:$0 sm:$0xff] }
   0xc   :  { %534 = vmatmul.mubr.msk.f32.gmra.mrb[2].mxu0 %vm44_vm1, %v17_v9  ;;  %555 = vmatmul.mubr.msk.f32.gmra.mrb[2].mxu1 %vm44_vm1, %v31_v10 }
   0xd   :  { %536 = vmatprep.mubr.msk.f32.mxu0 %vm44_vm1, %v18_v11  ;;  %557 = vmatprep.mubr.msk.f32.mxu1 %vm44_vm1, %v32_v12 }
  0x10   :  { %537 = vmatmul.mubr.msk.f32.gmra.mrb[4].mxu0 %vm44_vm1, %v19_v13  ;;  %558 = vmatmul.mubr.msk.f32.gmra.mrb[4].mxu1 %vm44_vm1, %v33_v14 }
  0x11   :  { %539 = vmatprep.mubr.msk.f32.mxu0 %vm44_vm1, %v20_v15  ;;  %560 = vmatprep.mubr.msk.f32.mxu1 %vm44_vm1, %v34_v16 }
  0x14   :  { %540 = vmatmul.mubr.msk.f32.gmra.mrb[6].mxu0 %vm44_vm1, %v21_v17  ;;  %561 = vmatmul.mubr.msk.f32.gmra.mrb[6].mxu1 %vm44_vm1, %v35_v18 }
  0x15   :  { %542 = vmatprep.mubr.msk.f32.mxu0 %vm44_vm1, %v22_v19  ;;  %563 = vmatprep.mubr.msk.f32.mxu1 %vm44_vm1, %v36_v20 }
  0x18   :  { %543 = vmatmul.mubr.msk.f32.gmra.mrb[8].mxu0 %vm44_vm1, %v23_v21  ;;  %564 = vmatmul.mubr.msk.f32.gmra.mrb[8].mxu1 %vm44_vm1, %v37_v22 }
  0x19   :  { %545 = vmatprep.mubr.msk.f32.mxu0 %vm44_vm1, %v24_v23  ;;  %566 = vmatprep.mubr.msk.f32.mxu1 %vm44_vm1, %v38_v24 }
  0x1c   :  { %546 = vmatmul.mubr.msk.f32.gmra.mrb[10].mxu0 %vm44_vm1, %v25_v25  ;;  %567 = vmatmul.mubr.msk.f32.gmra.mrb[10].mxu1 %vm44_vm1, %v39_v26 }
  0x1d   :  { %548 = vmatprep.mubr.msk.f32.mxu0 %vm44_vm1, %v26_v27  ;;  %569 = vmatprep.mubr.msk.f32.mxu1 %vm44_vm1, %v40_v28 }
  0x20   :  { %549 = vmatmul.mubr.msk.f32.gmra.mrb[12].mxu0 %vm44_vm1, %v27_v29  ;;  %570 = vmatmul.mubr.msk.f32.gmra.mrb[12].mxu1 %vm44_vm1, %v41_v30 }
  0xdb   :  { %v532_v32 = vpop.f32.mrb[0].mxu0  ;;  %v553_v34 = vpop.f32.mrb[0].mxu1 }
  0xdc   :  { %v344_v35 = vmul.f32 %v532_v32, %v723_v31  ;;  %v358_v36 = vmul.f32 %v553_v34, %v723_v31  ;;  %v199_v37 = vpop.f32.mrb[1].mxu0  ;;  %v269_v38 = vpop.f32.mrb[1].mxu1 }
  0xdd   :  { %v343_v39 = vmul.f32 %v723_v31, %v199_v37  ;;  %v357_v40 = vmul.f32 %v723_v31, %v269_v38 }
  0xde   :  { %v377_v41 = vadd.f32 %v728_v33, %v344_v35  ;;  %v391_v42 = vadd.f32 %v728_v33, %v358_v36 }
  0xdf   :  { %v376_v43 = vadd.f32 %v728_v33, %v343_v39  ;;  %v390_v44 = vadd.f32 %v728_v33, %v357_v40  ;;  %v535_v45 = vpop.f32.mrb[2].mxu0  ;;  %v556_v46 = vpop.f32.mrb[2].mxu1 }
  0xe0   :  { %v405_v47 = vmax.f32 %v377_v41, 0.0  ;;  %v419_v48 = vmax.f32 %v391_v42, 0.0  ;;  %v346_v49 = vmul.f32 %v535_v45, %v723_v31  ;;  %v360_v50 = vmul.f32 %v556_v46, %v723_v31  ;;  %v209_v51 = vpop.f32.mrb[3].mxu0  ;;  %v279_v52 = vpop.f32.mrb[3].mxu1 }
  0xe1   :  { %v404_v53 = vmax.f32 %v376_v43, 0.0  ;;  %v418_v54 = vmax.f32 %v390_v44, 0.0  ;;  %v345_v55 = vmul.f32 %v723_v31, %v209_v51  ;;  %v359_v56 = vmul.f32 %v723_v31, %v279_v52 }
  0xe2   :  { %434 = vst.msk [vmem:[%s901_s3 + $0x8] sm:$0xff] %vm432_vm4, %v405_v47  ;;  %448 = vst.msk [vmem:[%s901_s3 + $0x78] sm:$0xff] %vm432_vm4, %v419_v48  ;;  %v379_v57 = vadd.f32 %v728_v33, %v346_v49  ;;  %v393_v58 = vadd.f32 %v728_v33, %v360_v50 }
  0xe3   :  { %433 = vst.msk [vmem:[%s901_s3] sm:$0xff] %vm432_vm4, %v404_v53  ;;  %447 = vst.msk [vmem:[%s901_s3 + $0x70] sm:$0xff] %vm432_vm4, %v418_v54  ;;  %v378_v59 = vadd.f32 %v728_v33, %v345_v55  ;;  %v392_v60 = vadd.f32 %v728_v33, %v359_v56  ;;  %v538_v61 = vpop.f32.mrb[4].mxu0  ;;  %v559_v62 = vpop.f32.mrb[4].mxu1 }
  0xe4   :  { %v407_v63 = vmax.f32 %v379_v57, 0.0  ;;  %v421_v0 = vmax.f32 %v393_v58, 0.0  ;;  %v348_v1 = vmul.f32 %v538_v61, %v723_v31  ;;  %v362_v2 = vmul.f32 %v559_v62, %v723_v31  ;;  %v219_v3 = vpop.f32.mrb[5].mxu0  ;;  %v289_v4 = vpop.f32.mrb[5].mxu1 }
  0xe5   :  { %v406_v5 = vmax.f32 %v378_v59, 0.0  ;;  %v420_v6 = vmax.f32 %v392_v60, 0.0  ;;  %v347_v7 = vmul.f32 %v723_v31, %v219_v3  ;;  %v361_v8 = vmul.f32 %v723_v31, %v289_v4 }
  0xe6   :  { %436 = vst.msk [vmem:[%s901_s3 + $0x18] sm:$0xff] %vm432_vm4, %v407_v63  ;;  %450 = vst.msk [vmem:[%s901_s3 + $0x88] sm:$0xff] %vm432_vm4, %v421_v0  ;;  %v381_v9 = vadd.f32 %v728_v33, %v348_v1  ;;  %v395_v10 = vadd.f32 %v728_v33, %v362_v2 }
  0xe7   :  { %435 = vst.msk [vmem:[%s901_s3 + $0x10] sm:$0xff] %vm432_vm4, %v406_v5  ;;  %449 = vst.msk [vmem:[%s901_s3 + $0x80] sm:$0xff] %vm432_vm4, %v420_v6  ;;  %v380_v11 = vadd.f32 %v728_v33, %v347_v7  ;;  %v394_v12 = vadd.f32 %v728_v33, %v361_v8  ;;  %v541_v13 = vpop.f32.mrb[6].mxu0  ;;  %v562_v14 = vpop.f32.mrb[6].mxu1 }
  0xe8   :  { %v409_v15 = vmax.f32 %v381_v9, 0.0  ;;  %v423_v16 = vmax.f32 %v395_v10, 0.0  ;;  %v350_v17 = vmul.f32 %v541_v13, %v723_v31  ;;  %v364_v18 = vmul.f32 %v562_v14, %v723_v31  ;;  %v229_v19 = vpop.f32.mrb[7].mxu0  ;;  %v299_v20 = vpop.f32.mrb[7].mxu1 }
  0xe9   :  { %v408_v21 = vmax.f32 %v380_v11, 0.0  ;;  %v422_v22 = vmax.f32 %v394_v12, 0.0  ;;  %v349_v23 = vmul.f32 %v723_v31, %v229_v19  ;;  %v363_v24 = vmul.f32 %v723_v31, %v299_v20 }
  0xea   :  { %438 = vst.msk [vmem:[%s901_s3 + $0x28] sm:$0xff] %vm432_vm4, %v409_v15  ;;  %452 = vst.msk [vmem:[%s901_s3 + $0x98] sm:$0xff] %vm432_vm4, %v423_v16  ;;  %v383_v25 = vadd.f32 %v728_v33, %v350_v17  ;;  %v397_v26 = vadd.f32 %v728_v33, %v364_v18 }
  0xeb   :  { %437 = vst.msk [vmem:[%s901_s3 + $0x20] sm:$0xff] %vm432_vm4, %v408_v21  ;;  %451 = vst.msk [vmem:[%s901_s3 + $0x90] sm:$0xff] %vm432_vm4, %v422_v22  ;;  %v382_v27 = vadd.f32 %v728_v33, %v349_v23  ;;  %v396_v28 = vadd.f32 %v728_v33, %v363_v24  ;;  %v544_v29 = vpop.f32.mrb[8].mxu0  ;;  %v565_v30 = vpop.f32.mrb[8].mxu1 }
  0xec   :  { %v411_v32 = vmax.f32 %v383_v25, 0.0  ;;  %v425_v34 = vmax.f32 %v397_v26, 0.0  ;;  %v352_v35 = vmul.f32 %v544_v29, %v723_v31  ;;  %v366_v36 = vmul.f32 %v565_v30, %v723_v31  ;;  %v239_v37 = vpop.f32.mrb[9].mxu0  ;;  %v309_v38 = vpop.f32.mrb[9].mxu1 }
  0xed   :  { %v410_v39 = vmax.f32 %v382_v27, 0.0  ;;  %v424_v40 = vmax.f32 %v396_v28, 0.0  ;;  %v351_v41 = vmul.f32 %v723_v31, %v239_v37  ;;  %v365_v42 = vmul.f32 %v723_v31, %v309_v38 }
  0xee   :  { %440 = vst.msk [vmem:[%s901_s3 + $0x38] sm:$0xff] %vm432_vm4, %v411_v32  ;;  %454 = vst.msk [vmem:[%s901_s3 + $0xa8] sm:$0xff] %vm432_vm4, %v425_v34  ;;  %v385_v43 = vadd.f32 %v728_v33, %v352_v35  ;;  %v399_v44 = vadd.f32 %v728_v33, %v366_v36 }
  0xef   :  { %439 = vst.msk [vmem:[%s901_s3 + $0x30] sm:$0xff] %vm432_vm4, %v410_v39  ;;  %453 = vst.msk [vmem:[%s901_s3 + $0xa0] sm:$0xff] %vm432_vm4, %v424_v40  ;;  %v384_v45 = vadd.f32 %v728_v33, %v351_v41  ;;  %v398_v46 = vadd.f32 %v728_v33, %v365_v42  ;;  %v547_v47 = vpop.f32.mrb[10].mxu0  ;;  %v568_v48 = vpop.f32.mrb[10].mxu1 }
  0xf0   :  { %v413_v49 = vmax.f32 %v385_v43, 0.0  ;;  %v427_v50 = vmax.f32 %v399_v44, 0.0  ;;  %v354_v51 = vmul.f32 %v547_v47, %v723_v31  ;;  %v368_v52 = vmul.f32 %v568_v48, %v723_v31  ;;  %v249_v53 = vpop.f32.mrb[11].mxu0  ;;  %v319_v54 = vpop.f32.mrb[11].mxu1 }
  0xf1   :  { %v412_v55 = vmax.f32 %v384_v45, 0.0  ;;  %v426_v56 = vmax.f32 %v398_v46, 0.0  ;;  %v353_v57 = vmul.f32 %v723_v31, %v249_v53  ;;  %v367_v58 = vmul.f32 %v723_v31, %v319_v54 }
  0xf2   :  { %442 = vst.msk [vmem:[%s901_s3 + $0x48] sm:$0xff] %vm432_vm4, %v413_v49  ;;  %456 = vst.msk [vmem:[%s901_s3 + $0xb8] sm:$0xff] %vm432_vm4, %v427_v50  ;;  %v387_v59 = vadd.f32 %v728_v33, %v354_v51  ;;  %v401_v60 = vadd.f32 %v728_v33, %v368_v52 }
  0xf3   :  { %441 = vst.msk [vmem:[%s901_s3 + $0x40] sm:$0xff] %vm432_vm4, %v412_v55  ;;  %455 = vst.msk [vmem:[%s901_s3 + $0xb0] sm:$0xff] %vm432_vm4, %v426_v56  ;;  %v386_v61 = vadd.f32 %v728_v33, %v353_v57  ;;  %v400_v62 = vadd.f32 %v728_v33, %v367_v58  ;;  %v550_v63 = vpop.f32.mrb[12].mxu0  ;;  %v571_v0 = vpop.f32.mrb[12].mxu1 }
  0xf4   :  { %v415_v1 = vmax.f32 %v387_v59, 0.0  ;;  %v429_v2 = vmax.f32 %v401_v60, 0.0  ;;  %v356_v3 = vmul.f32 %v550_v63, %v723_v31  ;;  %v370_v4 = vmul.f32 %v571_v0, %v723_v31  ;;  %v259_v5 = vpop.f32.mrb[13].mxu0  ;;  %v329_v6 = vpop.f32.mrb[13].mxu1 }
  0xf5   :  { %v414_v7 = vmax.f32 %v386_v61, 0.0  ;;  %v428_v8 = vmax.f32 %v400_v62, 0.0  ;;  %v355_v9 = vmul.f32 %v723_v31, %v259_v5  ;;  %v369_v10 = vmul.f32 %v723_v31, %v329_v6 }
  0xf6   :  { %444 = vst.msk [vmem:[%s901_s3 + $0x58] sm:$0xff] %vm432_vm4, %v415_v1  ;;  %458 = vst.msk [vmem:[%s901_s3 + $0xc8] sm:$0xff] %vm432_vm4, %v429_v2  ;;  %v389_v11 = vadd.f32 %v728_v33, %v356_v3  ;;  %v403_v12 = vadd.f32 %v728_v33, %v370_v4 }
  0xf7   :  { %443 = vst.msk [vmem:[%s901_s3 + $0x50] sm:$0xff] %vm432_vm4, %v414_v7  ;;  %457 = vst.msk [vmem:[%s901_s3 + $0xc0] sm:$0xff] %vm432_vm4, %v428_v8  ;;  %v388_v31 = vadd.f32 %v728_v33, %v355_v9  ;;  %v402_v13 = vadd.f32 %v728_v33, %v369_v10 }
  0xf8   :  { %v417_v14 = vmax.f32 %v389_v11, 0.0  ;;  %v431_v15 = vmax.f32 %v403_v12, 0.0 }
  0xf9   :  { %v416_v16 = vmax.f32 %v388_v31, 0.0  ;;  %v430_v17 = vmax.f32 %v402_v13, 0.0 }
  0xfa   :  { %446 = vst.msk [vmem:[%s901_s3 + $0x68] sm:$0xff] %vm432_vm4, %v417_v14  ;;  %460 = vst.msk [vmem:[%s901_s3 + $0xd8] sm:$0xff] %vm432_vm4, %v431_v15 }
  0xfb   :  { %445 = vst.msk [vmem:[%s901_s3 + $0x60] sm:$0xff] %vm432_vm4, %v416_v16  ;;  %459 = vst.msk [vmem:[%s901_s3 + $0xd0] sm:$0xff] %vm432_vm4, %v430_v17 }

</bundles_post_ra>
